<compile_context>
chip_gen: v5e
topology: v5e:2x2
jax: 0.10.0
libtpu: 0.0.40
codegen_flags: <defaults>
</compile_context>

<pallas_src>
import jax
import jax.numpy as jnp
from jax.experimental import pallas as pl
from jax.experimental.pallas import tpu as pltpu

LANE = 128       # vreg lane width (last dim)
BF16_ROWS = 16   # bf16 vreg tile is (16, 128): keep batch tiles 16-row aligned


def _round_up(n, m):
    return ((n + m - 1) // m) * m


def _cdiv(a, b):
    return -(-a // b)


def _vmem_limit_bytes():
    """Per-generation VMEM budget with headroom (v5e/v6e ~108 MiB, v7x ~54 MiB)."""
    cap = None
    try:
        cap = getattr(pltpu.get_tpu_info(), "vmem_capacity_bytes", None)
    except Exception:
        cap = None
    if not cap:
        cap = 64 * 1024 * 1024  # conservative fallback (v7x per-core physical)
    return int(cap * 0.85)


def _choose_batch_tile(batch, block_batch):
    if block_batch % BF16_ROWS != 0:
        raise ValueError("block_batch must be a multiple of 16 (bf16 row packing)")
    tb = min(block_batch, _round_up(batch, BF16_ROWS))
    # Ensure >= 2 grid steps when the batch is big enough, so the "parallel"
    # batch axis can be sharded across both TensorCores on v7x.
    if batch >= 2 * BF16_ROWS:
        tb = min(tb, _round_up(_cdiv(batch, 2), BF16_ROWS))
    return tb


def mlp_kernel(x_ref, w1_ref, b1_ref, w2_ref, b2_ref, w3_ref, b3_ref, o_ref):
    # In-kernel f32 -> bf16 cast of the activation tile (avoids a padded bf16
    # copy of x in HBM; the VPU cast hides under the MXU).
    x = x_ref[...].astype(jnp.bfloat16)

    # fc1 + ReLU : (TB, Din)bf16 @ (Din, H_p)bf16 -> f32 acc
    h1 = jnp.dot(x, w1_ref[...], preferred_element_type=jnp.float32)
    h1 = jnp.maximum(h1 + b1_ref[...], 0.0).astype(jnp.bfloat16)

    # fc2 + ReLU : (TB, H_p) @ (H_p, H_p)
    h2 = jnp.dot(h1, w2_ref[...], preferred_element_type=jnp.float32)
    h2 = jnp.maximum(h2 + b2_ref[...], 0.0).astype(jnp.bfloat16)

    # fc3 (no activation) : (TB, H_p) @ (H_p, Dout_p)
    out = jnp.dot(h2, w3_ref[...], preferred_element_type=jnp.float32)
    o_ref[...] = (out + b3_ref[...]).astype(o_ref.dtype)


def mlp_forward(x, kparams, output_dim, *, block_batch=256):
    """x: (batch, input_dim) f32. kparams: lane-padded bf16 weights / f32 biases."""
    w1, b1, w2, b2, w3, b3 = (kparams[k] for k in ("w1", "b1", "w2", "b2", "w3", "b3"))
    batch, d_in = x.shape
    if w1.shape[0] != d_in:
        raise ValueError("x feature dim does not match w1")
    h_p = w2.shape[0]
    d_out_p = w3.shape[1]

    tb = _choose_batch_tile(batch, block_batch)
    n_steps = _cdiv(batch, tb)
    batch_p = n_steps * tb   # padded output rows (garbage rows sliced away below)

    vmem_limit = _vmem_limit_bytes()
    resident_bytes = sum(int(a.size) * a.dtype.itemsize for a in (w1, b1, w2, b2, w3, b3))
    if resident_bytes > (3 * vmem_limit) // 4:
        # TODO(synk): for very large hidden dims, tile fc2/fc3 over an extra N (or K) grid axis with a pl.when-initialized f32 VMEM accumulator instead of keeping all weights resident.
        raise ValueError(
            f"Resident weights ({resident_bytes / 2**20:.1f} MiB) exceed the VMEM "
            f"budget ({vmem_limit / 2**20:.1f} MiB) for the all-resident kernel.")

    # Weights/biases stay VMEM-resident across all batch steps: constant
    # index_map + single buffer (no pointless double-buffering of invariants).
    def resident(a):
        return pl.BlockSpec(a.shape, lambda i: (0, 0), pipeline_mode=pl.Buffered(1))

    flops = 2 * batch_p * (d_in * h_p + h_p * h_p + h_p * d_out_p)
    bytes_accessed = (int(x.size) * x.dtype.itemsize
                      + resident_bytes
                      + batch_p * d_out_p * 4)

    out_p = pl.pallas_call(
        mlp_kernel,
        out_shape=jax.ShapeDtypeStruct((batch_p, d_out_p), jnp.float32),
        grid_spec=pl.GridSpec(
            grid=(n_steps,),
            in_specs=[
                # x tile, pipelined across batch steps; full-extent feature dim
                # (legal without 128-padding), boundary rows handled by Pallas.
                pl.BlockSpec((tb, d_in), lambda i: (i, 0)),
                resident(w1), resident(b1),
                resident(w2), resident(b2),
                resident(w3), resident(b3),
            ],
            out_specs=pl.BlockSpec((tb, d_out_p), lambda i: (i, 0)),
        ),
        compiler_params=pltpu.CompilerParams(
            dimension_semantics=("parallel",),   # megacore sharding on v7x
            vmem_limit_bytes=vmem_limit,
        ),
        cost_estimate=pl.CostEstimate(
            flops=flops, transcendentals=0, bytes_accessed=bytes_accessed),
    )(x, w1, b1, w2, b2, w3, b3)

    # Slice away batch padding rows and output lane padding.
    return out_p[:batch, :output_dim]


def init_params(key, input_dim, hidden_dim, output_dim):
    """nn.Linear-style init. Returns (logical f32 params, kernel params).

    Kernel weights are transposed to (in, out) layout with only the *output*
    (lane) feature dims zero-padded to multiples of 128, cast to bf16. Biases
    stay f32 with shape (1, out_padded) for clean VMEM broadcasting.
    """
    h_p = _round_up(hidden_dim, LANE)
    d_out_p = _round_up(output_dim, LANE)

    ks = jax.random.split(key, 6)

    def lin(kw, kb, fan_in, fan_out, fan_in_k, fan_out_p):
        bound = 1.0 / jnp.sqrt(jnp.float32(fan_in))
        w = jax.random.uniform(kw, (fan_in, fan_out), jnp.float32, -bound, bound)
        b = jax.random.uniform(kb, (fan_out,), jnp.float32, -bound, bound)
        w_p = jnp.zeros((fan_in_k, fan_out_p), jnp.float32).at[:fan_in, :fan_out].set(w)
        b_p = jnp.zeros((1, fan_out_p), jnp.float32).at[0, :fan_out].set(b)
        return (w, b), (w_p.astype(jnp.bfloat16), b_p)

    # fc1 K-dim stays the true input_dim (no K padding needed); fc2/fc3 K dims
    # are the padded hidden width so the zero-padded hidden lanes feed zeros.
    (w1, b1), (w1k, b1k) = lin(ks[0], ks[1], input_dim, hidden_dim, input_dim, h_p)
    (w2, b2), (w2k, b2k) = lin(ks[2], ks[3], hidden_dim, hidden_dim, h_p, h_p)
    (w3, b3), (w3k, b3k) = lin(ks[4], ks[5], hidden_dim, output_dim, h_p, d_out_p)

    logical = dict(w1=w1, b1=b1, w2=w2, b2=b2, w3=w3, b3=b3)
    kernel = dict(w1=w1k, b1=b1k, w2=w2k, b2=b2k, w3=w3k, b3=b3k)
    return logical, kernel


if __name__ == "__main__":
    input_dim, hidden_dim, output_dim = 16, 32, 8
    batch = 8

    key = jax.random.PRNGKey(0)
    k_x, k_p = jax.random.split(key)
    x = jax.random.normal(k_x, (batch, input_dim), jnp.float32)
    logical_params, kernel_params = init_params(k_p, input_dim, hidden_dim, output_dim)

    out = mlp_forward(x, kernel_params, output_dim)
    out = jax.block_until_ready(out)

    # Pure-JAX f32 reference (same semantics as the PyTorch module).
    def ref(x, p):
        h = jnp.maximum(x @ p["w1"] + p["b1"], 0.0)
        h = jnp.maximum(h @ p["w2"] + p["b2"], 0.0)
        return h @ p["w3"] + p["b3"]

    expected = ref(x, logical_params)
    assert out.shape == (batch, output_dim)
    # bf16 weights/activations in the kernel -> loosened tolerance vs f32 reference.
    assert jnp.allclose(out, expected, atol=5e-2, rtol=5e-2), (
        float(jnp.max(jnp.abs(out - expected))))

    print("KERNEL_OK")
</pallas_src>

<mosaic_0001>
module attributes {stable_mosaic.version = 11 : i64} {
  func.func @mlp_kernel(%arg0: i32, %arg1: memref<16x16xf32, #tpu.memory_space<vmem>>, %arg2: memref<16x128xbf16, #tpu.memory_space<vmem>>, %arg3: memref<1x128xf32, #tpu.memory_space<vmem>>, %arg4: memref<128x128xbf16, #tpu.memory_space<vmem>>, %arg5: memref<1x128xf32, #tpu.memory_space<vmem>>, %arg6: memref<128x128xbf16, #tpu.memory_space<vmem>>, %arg7: memref<1x128xf32, #tpu.memory_space<vmem>>, %arg8: memref<16x128xf32, #tpu.memory_space<vmem>>) attributes {dimension_semantics = [#tpu.dimension_semantics<parallel>], iteration_bounds = array<i64: 1>, scalar_prefetch = 0 : i64, scratch_operands = 0 : i64, tpu.core_type = #tpu.core_type<tc>, window_params = [{transform_indices = @transform_0, window_bounds = array<i64: 16, 16>}, {pipeline_mode = #tpu.pipeline_mode<synchronous>, transform_indices = @transform_1, window_bounds = array<i64: 16, 128>}, {pipeline_mode = #tpu.pipeline_mode<synchronous>, transform_indices = @transform_2, window_bounds = array<i64: 1, 128>}, {pipeline_mode = #tpu.pipeline_mode<synchronous>, transform_indices = @transform_3, window_bounds = array<i64: 128, 128>}, {pipeline_mode = #tpu.pipeline_mode<synchronous>, transform_indices = @transform_4, window_bounds = array<i64: 1, 128>}, {pipeline_mode = #tpu.pipeline_mode<synchronous>, transform_indices = @transform_5, window_bounds = array<i64: 128, 128>}, {pipeline_mode = #tpu.pipeline_mode<synchronous>, transform_indices = @transform_6, window_bounds = array<i64: 1, 128>}, {transform_indices = @transform_7, window_bounds = array<i64: 16, 128>}]} {
    %c0 = arith.constant 0 : index
    %c0_0 = arith.constant 0 : index
    %0 = vector.load %arg1[%c0, %c0_0] : memref<16x16xf32, #tpu.memory_space<vmem>>, vector<16x16xf32>
    %1 = arith.truncf %0 : vector<16x16xf32> to vector<16x16xbf16>
    %c0_1 = arith.constant 0 : index
    %c0_2 = arith.constant 0 : index
    %2 = vector.load %arg2[%c0_1, %c0_2] : memref<16x128xbf16, #tpu.memory_space<vmem>>, vector<16x128xbf16>
    %cst = arith.constant dense<0.000000e+00> : vector<16x128xf32>
    %3 = tpu.matmul %1, %2, %cst {dimension_numbers = #tpu.dot_dimension_numbers<[1], [0], [0], [1], [0, 0, 1, 1], [], []>} : vector<16x16xbf16>, vector<16x128xbf16>, vector<16x128xf32> -> vector<16x128xf32>
    %c0_3 = arith.constant 0 : index
    %c0_4 = arith.constant 0 : index
    %4 = vector.load %arg3[%c0_3, %c0_4] : memref<1x128xf32, #tpu.memory_space<vmem>>, vector<1x128xf32>
    %5 = vector.broadcast %4 : vector<1x128xf32> to vector<16x128xf32>
    %6 = arith.addf %3, %5 : vector<16x128xf32>
    %cst_5 = arith.constant 0.000000e+00 : f32
    %7 = vector.broadcast %cst_5 : f32 to vector<16x128xf32>
    %8 = arith.maximumf %6, %7 : vector<16x128xf32>
    %9 = arith.truncf %8 : vector<16x128xf32> to vector<16x128xbf16>
    %c0_6 = arith.constant 0 : index
    %c0_7 = arith.constant 0 : index
    %10 = vector.load %arg4[%c0_6, %c0_7] : memref<128x128xbf16, #tpu.memory_space<vmem>>, vector<128x128xbf16>
    %cst_8 = arith.constant dense<0.000000e+00> : vector<16x128xf32>
    %11 = tpu.matmul %9, %10, %cst_8 {dimension_numbers = #tpu.dot_dimension_numbers<[1], [0], [0], [1], [0, 0, 1, 1], [], []>} : vector<16x128xbf16>, vector<128x128xbf16>, vector<16x128xf32> -> vector<16x128xf32>
    %c0_9 = arith.constant 0 : index
    %c0_10 = arith.constant 0 : index
    %12 = vector.load %arg5[%c0_9, %c0_10] : memref<1x128xf32, #tpu.memory_space<vmem>>, vector<1x128xf32>
    %13 = vector.broadcast %12 : vector<1x128xf32> to vector<16x128xf32>
    %14 = arith.addf %11, %13 : vector<16x128xf32>
    %cst_11 = arith.constant 0.000000e+00 : f32
    %15 = vector.broadcast %cst_11 : f32 to vector<16x128xf32>
    %16 = arith.maximumf %14, %15 : vector<16x128xf32>
    %17 = arith.truncf %16 : vector<16x128xf32> to vector<16x128xbf16>
    %c0_12 = arith.constant 0 : index
    %c0_13 = arith.constant 0 : index
    %18 = vector.load %arg6[%c0_12, %c0_13] : memref<128x128xbf16, #tpu.memory_space<vmem>>, vector<128x128xbf16>
    %cst_14 = arith.constant dense<0.000000e+00> : vector<16x128xf32>
    %19 = tpu.matmul %17, %18, %cst_14 {dimension_numbers = #tpu.dot_dimension_numbers<[1], [0], [0], [1], [0, 0, 1, 1], [], []>} : vector<16x128xbf16>, vector<128x128xbf16>, vector<16x128xf32> -> vector<16x128xf32>
    %c0_15 = arith.constant 0 : index
    %c0_16 = arith.constant 0 : index
    %20 = vector.load %arg7[%c0_15, %c0_16] : memref<1x128xf32, #tpu.memory_space<vmem>>, vector<1x128xf32>
    %21 = vector.broadcast %20 : vector<1x128xf32> to vector<16x128xf32>
    %22 = arith.addf %19, %21 : vector<16x128xf32>
    %c0_17 = arith.constant 0 : index
    %c0_18 = arith.constant 0 : index
    %23 = vector.load %arg8[%c0_17, %c0_18] : memref<16x128xf32, #tpu.memory_space<vmem>>, vector<16x128xf32>
    tpu.vector_store %arg8[%c0_17, %c0_18], %22 {strides = array<i32>} : memref<16x128xf32, #tpu.memory_space<vmem>>, vector<16x128xf32>,
    return
  }
  func.func @transform_0(%arg0: i32) -> (i32, i32) {
    %c0_i32 = arith.constant 0 : i32
    %c0_i32_0 = arith.constant 0 : i32
    return %arg0, %c0_i32 : i32, i32
  }
  func.func @transform_1(%arg0: i32) -> (i32, i32) {
    %c0_i32 = arith.constant 0 : i32
    %c0_i32_0 = arith.constant 0 : i32
    %c0_i32_1 = arith.constant 0 : i32
    return %c0_i32, %c0_i32_0 : i32, i32
  }
  func.func @transform_2(%arg0: i32) -> (i32, i32) {
    %c0_i32 = arith.constant 0 : i32
    %c0_i32_0 = arith.constant 0 : i32
    %c0_i32_1 = arith.constant 0 : i32
    return %c0_i32, %c0_i32_0 : i32, i32
  }
  func.func @transform_3(%arg0: i32) -> (i32, i32) {
    %c0_i32 = arith.constant 0 : i32
    %c0_i32_0 = arith.constant 0 : i32
    %c0_i32_1 = arith.constant 0 : i32
    return %c0_i32, %c0_i32_0 : i32, i32
  }
  func.func @transform_4(%arg0: i32) -> (i32, i32) {
    %c0_i32 = arith.constant 0 : i32
    %c0_i32_0 = arith.constant 0 : i32
    %c0_i32_1 = arith.constant 0 : i32
    return %c0_i32, %c0_i32_0 : i32, i32
  }
  func.func @transform_5(%arg0: i32) -> (i32, i32) {
    %c0_i32 = arith.constant 0 : i32
    %c0_i32_0 = arith.constant 0 : i32
    %c0_i32_1 = arith.constant 0 : i32
    return %c0_i32, %c0_i32_0 : i32, i32
  }
  func.func @transform_6(%arg0: i32) -> (i32, i32) {
    %c0_i32 = arith.constant 0 : i32
    %c0_i32_0 = arith.constant 0 : i32
    %c0_i32_1 = arith.constant 0 : i32
    return %c0_i32, %c0_i32_0 : i32, i32
  }
  func.func @transform_7(%arg0: i32) -> (i32, i32) {
    %c0_i32 = arith.constant 0 : i32
    %c0_i32_0 = arith.constant 0 : i32
    return %arg0, %c0_i32 : i32, i32
  }
}

</mosaic_0001>

<bundles_post_ra>
// kernel: tpu_custom_call.1
= control target key start
LH: loop header
LB: loop body
LE: loop exit
PB: predicated region body
PF: predicated region fallthrough
CT: control target
= control target key end

     0   :  { %12 = vsyncpa [#allocation3], 0  ;;  %s622_s0 = inlined_call_operand.hbm [shape: f32[8,16], index: 0, kind: input, shape index: {}]   ;;  %s623_s1 = inlined_call_operand.hbm [shape: bf16[16,128], index: 1, kind: input, shape index: {}]   ;;  %s624_s2 = inlined_call_operand.vmem [shape: f32[1,128], index: 2, kind: input, shape index: {}]   ;;  %s625_s3 = inlined_call_operand.hbm [shape: bf16[128,128], index: 3, kind: input, shape index: {}]   ;;  %s626_s4 = inlined_call_operand.vmem [shape: f32[1,128], index: 4, kind: input, shape index: {}]   ;;  %s627_s5 = inlined_call_operand.hbm [shape: bf16[128,128], index: 5, kind: input, shape index: {}]   ;;  %s628_s6 = inlined_call_operand.vmem [shape: f32[1,128], index: 6, kind: input, shape index: {}]   ;;  %s629_s7 = inlined_call_operand.hbm [shape: f32[16,128], index: 7, kind: output, shape index: {}]  }
   0x1   :  { %13 = vsyncpa [#allocation6], 0 }
   0x2   :  { %14 = vsyncpa [#allocation9], 0 }
   0x3   :  { %15 = vsyncpa [#allocation4], 0  ;;  %s33_s26 = sshll.u32 %s623_s1, 4  ;;  %s34_s26 = int_to_ptr.hbm [resolvable:$true] %s33_s26 }
   0x4   :  { %19 = vsyncadd [#allocation3], 128  ;;  %s543_s27 = smov [#allocation5]   ;;  %s20_s8 = sshll.u32 %s622_s0, 4  ;;  %s21_s8 = int_to_ptr.hbm [resolvable:$true] %s20_s8 }
   0x5   :  { %s35_s28 = sshll.u32 %s543_s27, 4  ;;  %s544_s9 = smov 64   ;;  %s36_s28 = int_to_ptr.vmem [resolvable:$true] %s35_s28 }
   0x6   :  { %s545_s10 = smov 4   ;;  %s546_s11 = smov [#allocation2]  }
   0x7   :  { %41 = dma.hbm_to_vmem [thread:$0]  %s34_s26, 128, %s36_s28, [#allocation6], %s544_s9, %s544_s9, %s545_s10  }
   0x8   :  { %s22_s12 = sshll.u32 %s546_s11, 4  ;;  %s547_s13 = smov 128   ;;  %s23_s12 = int_to_ptr.vmem [resolvable:$true] %s22_s12 }
   0x9   :  { %s548_s14 = smov 8   ;;  %s48_s16 = sshll.u32 %s625_s3, 4  ;;  %s49_s16 = int_to_ptr.hbm [resolvable:$true] %s48_s16 }
   0xa   :  { %28 = dma.hbm_to_vmem [thread:$0]  %s21_s8, 128, %s23_s12, [#allocation3], %s547_s13, %s547_s13, %s548_s14  }
   0xb   :  { %s549_s17 = smov [#allocation7]   ;;  %s63_s20 = sshll.u32 %s627_s5, 4  ;;  %s64_s20 = int_to_ptr.hbm [resolvable:$true] %s63_s20 }
   0xc   :  { %s50_s0 = sshll.u32 %s549_s17, 4  ;;  %s550_s21 = smov [#allocation8]   ;;  %s51_s0 = int_to_ptr.vmem [resolvable:$true] %s50_s0 }
   0xd   :  { %56 = dma.hbm_to_vmem [thread:$0]  %s49_s16, 1024, %s51_s0, [#allocation6], %s544_s9, %s544_s9, %s545_s10  }
   0xe   :  { %s65_s22 = sshll.u32 %s550_s21, 4  ;;  %s66_s22 = int_to_ptr.vmem [resolvable:$true] %s65_s22 }
   0xf   :  { %71 = dma.hbm_to_vmem [thread:$0]  %s64_s20, 1024, %s66_s22, [#allocation9], %s544_s9, %s544_s9, %s545_s10  }
  0x10   :  { %535 = dma.done.wait [#allocation3], 256  }
  0x11   :  { %536 = vsyncadd [#allocation3], 4294967040 }
  0x12   :  { %537 = dma.done.wait [#allocation6], 1152  }
  0x13   :  { %538 = vsyncadd [#allocation6], 4294966144 }
  0x14   :  { %539 = dma.done.wait [#allocation9], 1024  }
  0x15   :  { %540 = vsyncadd [#allocation9], 4294966272  ;;  %v386_v0 = vld [vmem:[#allocation5] sm:$0xff]  ;;  %v91_v1 = vld [vmem:[#allocation2] sm:$0xff]  ;;  %vm106_vm0 = vcmask 130048   ;;  %s551_s26 = smov [#allocation10]  }
  0x16   :  { %v92_v2 = vld [vmem:[#allocation2 + $0x8] sm:$0xff]  ;;  %v394_v4 = vld [vmem:[#allocation7 + $0x38] sm:$0xff]  ;;  %117 = vmatpush.bf16.msra.mxu0 %v386_v0  ;;  %v392_v6 = vld [vmem:[#allocation7 + $0x28] sm:$0xff]  ;;  %s300_s27 = sshll.u32 %s551_s26, 4  ;;  %s301_s27 = int_to_ptr.vmem [resolvable:$true] %s300_s27 }
  0x17   :  { %v93_v3 = vpack.c.bf16 %v92_v2, %v91_v1  ;;  %195 = vmatpush.bf16.msra.mxu1 %v394_v4  ;;  %v393_v5 = vld [vmem:[#allocation7 + $0x30] sm:$0xff]  ;;  %v391_v7 = vld [vmem:[#allocation7 + $0x20] sm:$0xff]  ;;  %v390_v8 = vld [vmem:[#allocation7 + $0x18] sm:$0xff] }
  0x18   :  { %v389_v9 = vld [vmem:[#allocation7 + $0x10] sm:$0xff]  ;;  %v388_v10 = vld [vmem:[#allocation7 + $0x8] sm:$0xff]  ;;  %v387_v11 = vld [vmem:[#allocation7] sm:$0xff] }
  0x19   :  { %321 = vmatmul.msk.bf16.vlgmr.msra.gmra.mxu0 %vm106_vm0, %v93_v3  ;;  %v402_v12 = vld [vmem:[#allocation8 + $0x38] sm:$0xff]  ;;  %v401_v13 = vld [vmem:[#allocation8 + $0x30] sm:$0xff]  ;;  %v400_v14 = vld [vmem:[#allocation8 + $0x28] sm:$0xff] }
  0x1a   :  { %280 = vmatpush.bf16.msra.mxu2 %v402_v12  ;;  %v399_v15 = vld [vmem:[#allocation8 + $0x20] sm:$0xff]  ;;  %v412_v17 = vld [vmem:[%s624_s2] ss:$0 sm:$0xff]  ;;  %v398_v24 = vld [vmem:[#allocation8 + $0x18] sm:$0xff] }
  0x1b   :  { %196 = vmatpush.bf16.msra.mxu1 %v393_v5  ;;  %v397_v25 = vld [vmem:[#allocation8 + $0x10] sm:$0xff]  ;;  %v396_v26 = vld [vmem:[#allocation8 + $0x8] sm:$0xff]  ;;  %v395_v27 = vld [vmem:[#allocation8] sm:$0xff] }
  0x1c   :  { %v413_v29 = vld [vmem:[%s626_s4] ss:$0 sm:$0xff]  ;;  %s302_s4 = sshll.u32 %s629_s7, 4  ;;  %s303_s4 = int_to_ptr.hbm [resolvable:$true] %s302_s4 }
  0x1d   :  { %v414_v36 = vld [vmem:[%s628_s6] ss:$0 sm:$0xff] }
  0x1e   :  { %281 = vmatpush.bf16.msra.mxu2 %v401_v13 }
  0x1f   :  { %197 = vmatpush.bf16.msra.mxu1 %v392_v6 }
  0x22   :  { %282 = vmatpush.bf16.msra.mxu2 %v400_v14 }
  0x23   :  { %198 = vmatpush.bf16.msra.mxu1 %v391_v7 }
  0x26   :  { %283 = vmatpush.bf16.msra.mxu2 %v399_v15 }
  0x27   :  { %199 = vmatpush.bf16.msra.mxu1 %v390_v8 }
  0x2a   :  { %284 = vmatpush.bf16.msra.mxu2 %v398_v24 }
  0x2b   :  { %200 = vmatpush.bf16.msra.mxu1 %v389_v9 }
  0x2e   :  { %285 = vmatpush.bf16.msra.mxu2 %v397_v25 }
  0x2f   :  { %201 = vmatpush.bf16.msra.mxu1 %v388_v10 }
  0x32   :  { %286 = vmatpush.bf16.msra.mxu2 %v396_v26 }
  0x33   :  { %202 = vmatpush.bf16.msra.mxu1 %v387_v11 }
  0x36   :  { %287 = vmatpush.bf16.msra.mxu2 %v395_v27 }
  0x96   :  { %v119_v16 = vpop.f32.mrf.mxu0 }
  0x97   :  { %v120_v18 = vadd.f32 %v412_v17, %v119_v16 }
  0x99   :  { %v124_v21 = vmax.f32 %v120_v18, 0.0 }
  0x9e   :  { %v121_v19 = vpop.f32.mrf.mxu0 }
  0x9f   :  { %v122_v20 = vadd.f32 %v412_v17, %v121_v19 }
  0xa1   :  { %v125_v22 = vmax.f32 %v122_v20, 0.0 }
  0xa3   :  { %v126_v23 = vpack.c.bf16 %v125_v22, %v124_v21 }
  0xa5   :  { %203 = vmatmul.bf16.vlgmr.msra.gmra.mxu1 %v126_v23 }
 0x122   :  { %v204_v28 = vpop.f32.mrf.mxu1 }
 0x123   :  { %v205_v30 = vadd.f32 %v413_v29, %v204_v28 }
 0x125   :  { %v209_v33 = vmax.f32 %v205_v30, 0.0 }
 0x12a   :  { %v206_v31 = vpop.f32.mrf.mxu1 }
 0x12b   :  { %v207_v32 = vadd.f32 %v413_v29, %v206_v31 }
 0x12d   :  { %v210_v34 = vmax.f32 %v207_v32, 0.0 }
 0x12f   :  { %v211_v35 = vpack.c.bf16 %v210_v34, %v209_v33 }
 0x131   :  { %288 = vmatmul.bf16.vlgmr.msra.gmra.mxu2 %v211_v35 }
 0x1b4   :  { %v289_v37 = vpop.f32.mrf.mxu2 }
 0x1b5   :  { %v290_v38 = vadd.f32 %v414_v36, %v289_v37 }
 0x1b7   :  { %294 = vst [vmem:[#allocation10] sm:$0xff] %v290_v38 }
 0x1bc   :  { %v291_v39 = vpop.f32.mrf.mxu2 }
 0x1bd   :  { %v292_v40 = vadd.f32 %v414_v36, %v291_v39 }
 0x1bf   :  { %295 = vst [vmem:[#allocation10 + $0x8] sm:$0xff] %v292_v40 }
 0x1c0   :  { %308 = dma.vmem_to_hbm [thread:$0]  %s301_s27, 256, %s303_s4, [#allocation4], %s547_s13, %s547_s13, %s548_s14  }
 0x1c1   :  { %541 = dma.done.wait [#allocation4], 256  }
 0x1c2   :  { %542 = vsyncadd [#allocation4], 4294967040 }
 0x1c3   :  { %313 = vsyncpa [#allocation3], 1 }
 0x1c4   :  { %314 = vsyncpa [#allocation6], 1 }
 0x1c5   :  { %315 = vsyncpa [#allocation9], 1 }
 0x1c6   :  { %316 = vsyncpa [#allocation4], 1 }

</bundles_post_ra>
